<compile_context>
chip_gen: v6e
topology: v6e:2x2x1
jax: 0.10.0
libtpu: 0.0.40
codegen_flags: <defaults>
</compile_context>

<pallas_src>
import jax
import jax.numpy as jnp
from jax.experimental import pallas as pl
from jax.experimental.pallas import tpu as pltpu


def _round_up(x: int, m: int) -> int:
    return ((x + m - 1) // m) * m


def _choose_row_tiling(n: int, row_tile: int):
    """Return (tm, n_rows); prefer tilings that need no row padding of bonds."""
    if n <= row_tile:
        return n, n                      # single full-row tile; legal for any n
    rt = _round_up(row_tile, 8)
    n8 = _round_up(n, 8)
    lo = max(8, (rt // 2) // 8 * 8)
    for tm in range(rt, lo - 1, -8):     # prefer a tile that divides round_up(n, 8)
        if n8 % tm == 0:
            return tm, n8                # at most 7 padded rows
    return rt, _round_up(n, rt)


def _choose_batch_block(b: int, tm: int, n_cols: int, n_feat_rows: int,
                        in_p: int, out_p: int, bonds_bytes: int, cbytes: int,
                        obytes: int, target_m: int = 512,
                        budget_bytes: int = 24 << 20) -> int:
    """Largest divisor of b that fills the MXU M dim without blowing VMEM."""
    per_b = 2 * (tm * n_cols * bonds_bytes          # bonds tile (double-buffered)
                 + n_feat_rows * in_p * cbytes      # feat block
                 + tm * out_p * obytes)             # out tile
    bb_max = min(b, 64,
                 max(1, target_m // max(tm, 1)),
                 max(1, budget_bytes // max(per_b, 1)))
    for d in range(bb_max, 0, -1):
        if b % d == 0:
            return d
    return 1


def gcn_layer_forward(features, bonds, weight, bias, *,
                      compute_dtype=jnp.bfloat16, row_tile=512):
    """features: [B, N, in_d], bonds: [B, N, N], weight: [out_d, in_d], bias: [out_d]."""
    B, N, in_d = features.shape
    out_d = weight.shape[0]
    out_dtype = features.dtype
    cdt = compute_dtype

    # Lane dims -> multiples of 128; the +1 spare lane carries the folded bias.
    in_p = _round_up(in_d + 1, 128)
    out_p = _round_up(out_d, 128)

    tm, n_rows = _choose_row_tiling(N, row_tile)
    num_row_tiles = n_rows // tm

    cbytes = jnp.dtype(cdt).itemsize
    obytes = jnp.dtype(out_dtype).itemsize
    bbytes = jnp.dtype(bonds.dtype).itemsize
    BB = _choose_batch_block(B, tm, N, N, in_p, out_p, bbytes, cbytes, obytes)
    num_batch_groups = B // BB

    # ---- features: small operand; build the bf16 copy with the bias ones-lane -----
    feat = jnp.zeros((B, N, in_p), cdt)
    feat = feat.at[:, :, :in_d].set(features.astype(cdt))
    feat = feat.at[:, :, in_d].set(1.0)                      # bias lane

    # ---- bonds: stream in original dtype; pad rows only if the tiling needs it ----
    if n_rows == N:
        bnd = bonds                                          # no HBM copy
    else:
        bnd = jnp.zeros((B, n_rows, N), bonds.dtype).at[:, :N, :].set(bonds)

    # ---- W^T with the bias folded into row `in_d` ----------------------------------
    w_t = jnp.zeros((in_p, out_p), cdt)
    w_t = w_t.at[:in_d, :out_d].set(weight.T.astype(cdt))
    w_t = w_t.at[in_d, :out_d].set(bias.astype(cdt))

    agg_first = in_p <= out_p

    # --------------------------------- kernels --------------------------------------
    def kernel_agg_first(feat_ref, bonds_ref, w_ref, out_ref):
        # out = (bonds @ [feat, 1]) @ [W^T ; bias]   (pairs the N^2 term with in_p)
        bnd_t = bonds_ref[...].astype(cdt)                               # (BB, tm, N)
        agg = jnp.einsum('bmk,bkd->bmd', bnd_t, feat_ref[...],
                         preferred_element_type=jnp.float32)             # (BB, tm, in_p)
        agg = agg.astype(cdt)
        if BB == 1:
            out = jnp.dot(agg[0], w_ref[...], preferred_element_type=jnp.float32)
            out_ref[0] = out.astype(out_ref.dtype)
        elif tm % 8 == 0:
            # Merge (BB, tm) into one M dim for a single shared @W matmul.
            out = jnp.dot(agg.reshape(BB * tm, in_p), w_ref[...],
                          preferred_element_type=jnp.float32)
            out_ref[...] = out.reshape(BB, tm, out_p).astype(out_ref.dtype)
        else:
            for bi in range(BB):
                out_ref[bi] = jnp.dot(agg[bi], w_ref[...],
                                      preferred_element_type=jnp.float32
                                      ).astype(out_ref.dtype)

    def kernel_linear_first(feat_ref, bonds_ref, w_ref, out_ref, h_ref):
        # h = [feat, 1] @ [W^T ; bias] once per batch group, reused by every row tile.
        @pl.when(pl.program_id(1) == 0)
        def _():
            for bi in range(BB):
                h = jnp.dot(feat_ref[bi], w_ref[...],
                            preferred_element_type=jnp.float32)
                h_ref[bi] = h.astype(h_ref.dtype)

        bnd_t = bonds_ref[...].astype(cdt)                               # (BB, tm, N)
        out = jnp.einsum('bmk,bko->bmo', bnd_t, h_ref[...],
                         preferred_element_type=jnp.float32)
        out_ref[...] = out.astype(out_ref.dtype)

    if agg_first:
        kernel = kernel_agg_first
        scratch_shapes = []
        dim_sem = ("parallel", "parallel")
        scratch_bytes = 0
    else:
        kernel = kernel_linear_first
        scratch_shapes = [pltpu.VMEM((BB, N, out_p), cdt)]
        dim_sem = ("parallel", "arbitrary")      # h scratch carried across row tiles
        scratch_bytes = BB * N * out_p * cbytes
        # TODO(synk): when num_batch_groups == 1 only one TensorCore is used on v7x;
        # recomputing h per row tile (or forcing agg-first) would re-enable core split.

    # ---- explicit VMEM budget: double-buffered blocks + scratch + margin -----------
    block_bytes = (BB * N * in_p * cbytes         # feat block
                   + BB * tm * N * bbytes         # bonds row tile (original dtype)
                   + BB * tm * out_p * obytes     # out tile
                   + in_p * out_p * cbytes)       # W (+ bias row)
    needed = 2 * block_bytes + scratch_bytes + (4 << 20)
    try:
        vmem_cap = int(pltpu.get_tpu_info().vmem_capacity_bytes)
    except Exception:
        vmem_cap = 64 << 20                        # conservative (v7x per-TC)
    vmem_limit = int(min(max(needed, 32 << 20),
                         max(vmem_cap - (12 << 20), 32 << 20),   # compiler headroom
                         112 << 20))

    out_padded = pl.pallas_call(
        kernel,
        out_shape=jax.ShapeDtypeStruct((B, n_rows, out_p), out_dtype),
        grid_spec=pltpu.PrefetchScalarGridSpec(
            num_scalar_prefetch=0,
            grid=(num_batch_groups, num_row_tiles),
            in_specs=[
                pl.BlockSpec((BB, N, in_p), lambda g, m: (g, 0, 0)),      # feat (+ones)
                pl.BlockSpec((BB, tm, N), lambda g, m: (g, m, 0)),        # bonds rows
                # TODO(synk): W maps to the same block every step; pl.Buffered(1) on it
                # would reclaim one VMEM buffer once single-buffering is verified.
                pl.BlockSpec((in_p, out_p), lambda g, m: (0, 0)),         # W^T + bias
            ],
            out_specs=pl.BlockSpec((BB, tm, out_p), lambda g, m: (g, m, 0)),
            scratch_shapes=scratch_shapes,
        ),
        compiler_params=pltpu.CompilerParams(
            dimension_semantics=dim_sem,
            vmem_limit_bytes=vmem_limit),
    )(feat, bnd, w_t)

    if n_rows == N and out_p == out_d:
        return out_padded
    return out_padded[:, :N, :out_d]


# Pure-JAX reference on the same bf16-quantized operands, f32 math.
def ref_gcn(features, bonds, weight, bias, compute_dtype=jnp.bfloat16):
    f = features.astype(compute_dtype).astype(jnp.float32)
    a = bonds.astype(compute_dtype).astype(jnp.float32)
    w = weight.astype(compute_dtype).astype(jnp.float32)
    b = bias.astype(compute_dtype).astype(jnp.float32)
    h = jnp.einsum("bni,oi->bno", f, w) + b
    return jnp.einsum("bnm,bmo->bno", a, h)


if __name__ == "__main__":
    key = jax.random.PRNGKey(0)

    # ---- case 1: in_d < out_d -> aggregate-first kernel, single row tile, BB=2 -----
    B, N, in_d, out_d = 2, 8, 16, 32
    k1, k2, k3, k4, key = jax.random.split(key, 5)
    features = jax.random.normal(k1, (B, N, in_d), dtype=jnp.float32)
    bonds = jax.random.uniform(k2, (B, N, N), dtype=jnp.float32)
    bound = 1.0 / (in_d ** 0.5)
    weight = jax.random.uniform(k3, (out_d, in_d), jnp.float32, -bound, bound)
    bias = jax.random.uniform(k4, (out_d,), jnp.float32, -bound, bound)

    out = jax.block_until_ready(gcn_layer_forward(features, bonds, weight, bias))
    ref = ref_gcn(features, bonds, weight, bias)
    assert out.shape == (B, N, out_d)
    assert jnp.allclose(out, ref, atol=3e-2, rtol=3e-2), \
        float(jnp.max(jnp.abs(out - ref)))

    # ---- case 2: in_d > out_d, several row tiles -> linear-first + h scratch -------
    B2, N2, in_d2, out_d2 = 2, 24, 160, 16
    k1, k2, k3, k4, key = jax.random.split(key, 5)
    features2 = jax.random.normal(k1, (B2, N2, in_d2), dtype=jnp.float32)
    bonds2 = jax.random.uniform(k2, (B2, N2, N2), dtype=jnp.float32)
    bound2 = 1.0 / (in_d2 ** 0.5)
    weight2 = jax.random.uniform(k3, (out_d2, in_d2), jnp.float32, -bound2, bound2)
    bias2 = jax.random.uniform(k4, (out_d2,), jnp.float32, -bound2, bound2)

    out2 = jax.block_until_ready(
        gcn_layer_forward(features2, bonds2, weight2, bias2, row_tile=8))
    ref2 = ref_gcn(features2, bonds2, weight2, bias2)
    assert out2.shape == (B2, N2, out_d2)
    assert jnp.allclose(out2, ref2, atol=3e-2, rtol=3e-2), \
        float(jnp.max(jnp.abs(out2 - ref2)))

    print("KERNEL_OK")
</pallas_src>

<mosaic_0001>
module attributes {stable_mosaic.version = 11 : i64} {
  func.func @kernel_agg_first(%arg0: i32, %arg1: i32, %arg2: memref<2x8x128xbf16, #tpu.memory_space<vmem>>, %arg3: memref<2x8x8xf32, #tpu.memory_space<vmem>>, %arg4: memref<128x128xbf16, #tpu.memory_space<vmem>>, %arg5: memref<2x8x128xf32, #tpu.memory_space<vmem>>) attributes {dimension_semantics = [#tpu.dimension_semantics<parallel>, #tpu.dimension_semantics<parallel>], iteration_bounds = array<i64: 1, 1>, scalar_prefetch = 0 : i64, scratch_operands = 0 : i64, tpu.core_type = #tpu.core_type<tc>, window_params = [{transform_indices = @transform_0, window_bounds = array<i64: 2, 8, 128>}, {transform_indices = @transform_1, window_bounds = array<i64: 2, 8, 8>}, {pipeline_mode = #tpu.pipeline_mode<synchronous>, transform_indices = @transform_2, window_bounds = array<i64: 128, 128>}, {transform_indices = @transform_3, window_bounds = array<i64: 2, 8, 128>}]} {
    %c0 = arith.constant 0 : index
    %c0_0 = arith.constant 0 : index
    %c0_1 = arith.constant 0 : index
    %0 = vector.load %arg3[%c0, %c0_0, %c0_1] : memref<2x8x8xf32, #tpu.memory_space<vmem>>, vector<2x8x8xf32>
    %1 = arith.truncf %0 : vector<2x8x8xf32> to vector<2x8x8xbf16>
    %c0_2 = arith.constant 0 : index
    %c0_3 = arith.constant 0 : index
    %c0_4 = arith.constant 0 : index
    %2 = vector.load %arg2[%c0_2, %c0_3, %c0_4] : memref<2x8x128xbf16, #tpu.memory_space<vmem>>, vector<2x8x128xbf16>
    "tpu.trace_start"() <{level = 10 : i32, message = "bmk,bkd->bmd"}> : () -> ()
    %cst = arith.constant dense<0.000000e+00> : vector<2x8x128xf32>
    %3 = tpu.matmul %1, %2, %cst {dimension_numbers = #tpu.dot_dimension_numbers<[2], [1], [1], [2], [0, 0, 0, 1, 1, 2], [0], [0]>} : vector<2x8x8xbf16>, vector<2x8x128xbf16>, vector<2x8x128xf32> -> vector<2x8x128xf32>
    "tpu.trace_stop"() : () -> ()
    %4 = arith.truncf %3 : vector<2x8x128xf32> to vector<2x8x128xbf16>
    %5 = vector.shape_cast %4 : vector<2x8x128xbf16> to vector<16x128xbf16>
    %c0_5 = arith.constant 0 : index
    %c0_6 = arith.constant 0 : index
    %6 = vector.load %arg4[%c0_5, %c0_6] : memref<128x128xbf16, #tpu.memory_space<vmem>>, vector<128x128xbf16>
    %cst_7 = arith.constant dense<0.000000e+00> : vector<16x128xf32>
    %7 = tpu.matmul %5, %6, %cst_7 {dimension_numbers = #tpu.dot_dimension_numbers<[1], [0], [0], [1], [0, 0, 1, 1], [], []>} : vector<16x128xbf16>, vector<128x128xbf16>, vector<16x128xf32> -> vector<16x128xf32>
    %8 = vector.shape_cast %7 : vector<16x128xf32> to vector<2x8x128xf32>
    %c0_8 = arith.constant 0 : index
    %c0_9 = arith.constant 0 : index
    %c0_10 = arith.constant 0 : index
    %9 = vector.load %arg5[%c0_8, %c0_9, %c0_10] : memref<2x8x128xf32, #tpu.memory_space<vmem>>, vector<2x8x128xf32>
    tpu.vector_store %arg5[%c0_8, %c0_9, %c0_10], %8 {strides = array<i32>} : memref<2x8x128xf32, #tpu.memory_space<vmem>>, vector<2x8x128xf32>,
    return
  }
  func.func @transform_0(%arg0: i32, %arg1: i32) -> (i32, i32, i32) {
    %c0_i32 = arith.constant 0 : i32
    %c0_i32_0 = arith.constant 0 : i32
    %c0_i32_1 = arith.constant 0 : i32
    return %arg0, %c0_i32, %c0_i32_0 : i32, i32, i32
  }
  func.func @transform_1(%arg0: i32, %arg1: i32) -> (i32, i32, i32) {
    %c0_i32 = arith.constant 0 : i32
    %c0_i32_0 = arith.constant 0 : i32
    return %arg0, %arg1, %c0_i32 : i32, i32, i32
  }
  func.func @transform_2(%arg0: i32, %arg1: i32) -> (i32, i32) {
    %c0_i32 = arith.constant 0 : i32
    %c0_i32_0 = arith.constant 0 : i32
    %c0_i32_1 = arith.constant 0 : i32
    return %c0_i32, %c0_i32_0 : i32, i32
  }
  func.func @transform_3(%arg0: i32, %arg1: i32) -> (i32, i32, i32) {
    %c0_i32 = arith.constant 0 : i32
    %c0_i32_0 = arith.constant 0 : i32
    return %arg0, %arg1, %c0_i32 : i32, i32, i32
  }
}

</mosaic_0001>

<bundles_post_ra>
// kernel: tpu_custom_call.1
= control target key start
LH: loop header
LB: loop body
LE: loop exit
PB: predicated region body
PF: predicated region fallthrough
CT: control target
= control target key end

     0   :  { %8 = vsyncpa [#allocation3], 0  ;;  %s504_s0 = inlined_call_operand.hbm [shape: bf16[2,8,128], index: 0, kind: input, shape index: {}]   ;;  %s505_s1 = inlined_call_operand.hbm [shape: f32[2,8,8], index: 1, kind: input, shape index: {}]   ;;  %s506_s2 = inlined_call_operand.hbm [shape: bf16[128,128], index: 2, kind: input, shape index: {}]   ;;  %s507_s3 = inlined_call_operand.hbm [shape: f32[2,8,128], index: 3, kind: output, shape index: {}]  }
   0x1   :  { %9 = vsyncpa [#allocation6], 0 }
   0x2   :  { %10 = vsyncpa [#allocation4], 0  ;;  %s451_s12 = smov [#allocation5]  }
   0x3   :  { %s28_s13 = sshll.u32 %s451_s12, 4  ;;  %s29_s13 = int_to_ptr.vmem [resolvable:$true] %s28_s13 }
   0x4   :  { %s373_s14 = scalar_lea.vmem %s29_s13, 256  ;;  %p378_p1 = scmp.lt.s32.totalorder %s29_s13, %s29_s13 }
   0x5   :  { %p374_p0 = scmp.ne.s32.totalorder %s29_s13, %s373_s14  ;;  %p379_p2 = scmp.lt.s32.totalorder %s373_s14, %s373_s14 }
   0x7   :  { %p380_p3 = por %p379_p2, %p378_p1 }
   0x9   :  { %p381_p4 = pnand %p380_p3, %p374_p0 }
   0xb   :  { %384 = shalt.err (!%p381_p4)
}
   0xc   :  { %s452_s15 = smov 128   ;;  %s453_s16 = smov 8  }
   0xd   :  { %34 = dma.hbm_to_vmem [thread:$0]  %s505_s1, 256, %s29_s13, [#allocation6], %s452_s15, %s452_s15, %s453_s16  }
   0xe   :  { %s454_s19 = smov [#allocation2]  }
   0xf   :  { %s16_s20 = sshll.u32 %s454_s19, 4  ;;  %s17_s20 = int_to_ptr.vmem [resolvable:$true] %s16_s20 }
  0x10   :  { %s393_s21 = scalar_lea.vmem %s17_s20, 128  ;;  %p398_p6 = scmp.lt.s32.totalorder %s17_s20, %s17_s20 }
  0x11   :  { %p394_p5 = scmp.ne.s32.totalorder %s17_s20, %s393_s21  ;;  %p399_p7 = scmp.lt.s32.totalorder %s393_s21, %s393_s21 }
  0x13   :  { %p400_p8 = por %p399_p7, %p398_p6 }
  0x15   :  { %p401_p9 = pnand %p400_p8, %p394_p5 }
  0x17   :  { %404 = shalt.err (!%p401_p9)
}
  0x18   :  { %s455_s22 = smov 64   ;;  %s456_s23 = smov 4  }
  0x19   :  { %22 = dma.hbm_to_vmem [thread:$0]  %s504_s0, 128, %s17_s20, [#allocation3], %s455_s22, %s455_s22, %s456_s23  }
  0x1a   :  { %s457_s26 = smov [#allocation7]  }
  0x1b   :  { %s40_s27 = sshll.u32 %s457_s26, 4  ;;  %s41_s27 = int_to_ptr.vmem [resolvable:$true] %s40_s27 }
  0x1c   :  { %s413_s1 = scalar_lea.vmem %s41_s27, 1024  ;;  %p418_p11 = scmp.lt.s32.totalorder %s41_s27, %s41_s27 }
  0x1d   :  { %p414_p10 = scmp.ne.s32.totalorder %s41_s27, %s413_s1  ;;  %p419_p12 = scmp.lt.s32.totalorder %s413_s1, %s413_s1 }
  0x1f   :  { %p420_p13 = por %p419_p12, %p418_p11 }
  0x21   :  { %p421_p0 = pnand %p420_p13, %p414_p10 }
  0x23   :  { %424 = shalt.err (!%p421_p0)
}
  0x24   :  { %46 = dma.hbm_to_vmem [thread:$0]  %s506_s2, 1024, %s41_s27, [#allocation6], %s455_s22, %s455_s22, %s456_s23  }
  0x25   :  { %445 = dma.done.wait [#allocation3], 128  }
  0x26   :  { %446 = vsyncadd [#allocation3], 4294967168 }
  0x27   :  { %447 = dma.done.wait [#allocation6], 1280  }
  0x28   :  { %448 = vsyncadd [#allocation6], 4294966016  ;;  %v458_v0 = vmov 0.0   ;;  %vm459_vm0 = vmmov 0   ;;  %vm67_vm1 = vcmask 1043456   ;;  %v57_v3 = vld [vmem:[#allocation5] sm:$0xff] }
  0x29   :  { %315 = vmatprep.subr.bf16.mxu1 %v458_v0  ;;  %317 = vmatprep.mubr.msk.bf16.mxu1 %vm459_vm0, %v458_v0  ;;  %v61_v1 = vld [vmem:[#allocation2] sm:$0xf]  ;;  %v62_v2 = vld [vmem:[#allocation2 + $0x4] sm:$0xf]  ;;  %v59_v5 = vpack.c.bf16 %v57_v3, %v57_v3  ;;  %vm63_vm2 = vcmask 64512   ;;  %v357_v6 = vld [vmem:[#allocation7 + $0x38] sm:$0xff]  }
  0x2a   :  { %327 = vmatprep.subr.bf16.mxu0 %v458_v0  ;;  %343 = vmatprep.mubr.msk.bf16.mxu0 %vm459_vm0, %v458_v0  ;;  %v69_v4 = vsel %vm67_vm1, %v61_v1, 0  ;;  %v115_v7 = vsel %vm67_vm1, %v62_v2, 0  ;;  %v358_v8 = vld [vmem:[#allocation7 + $0x30] sm:$0xff]   ;;  %v58_v9 = vld [vmem:[#allocation5 + $0x8] sm:$0xff]  ;;  %v359_v10 = vld [vmem:[#allocation7 + $0x28] sm:$0xff]   ;;  %s460_s0 = smov [#allocation8]  }
  0x2b   :  { %316 = vmatpush3.bf16.msra.mxu1 %v69_v4  ;;  %328 = vmatpush3.bf16.msra.mxu0 %v357_v6  ;;  %v60_v11 = vpack.c.bf16 %v58_v9, %v58_v9  ;;  %v360_v12 = vld [vmem:[#allocation7 + $0x20] sm:$0xff]   ;;  %v361_v13 = vld [vmem:[#allocation7 + $0x18] sm:$0xff]   ;;  %v362_v14 = vld [vmem:[#allocation7 + $0x10] sm:$0xff]   ;;  %s277_s2 = sshll.u32 %s460_s0, 4  ;;  %s278_s2 = int_to_ptr.vmem [resolvable:$true] %s277_s2 }
  0x2c   :  { %321 = vmatprep.subr.bf16.mxu1 %v458_v0  ;;  %329 = vmatprep.subr.bf16.mxu0 %v458_v0  ;;  %v363_v15 = vld [vmem:[#allocation7 + $0x8] sm:$0xff]   ;;  %v364_v16 = vld [vmem:[#allocation7] sm:$0xff]   ;;  %s425_s30 = scalar_lea.vmem %s278_s2, 256  ;;  %p430_p2 = scmp.lt.s32.totalorder %s278_s2, %s278_s2 }
  0x2d   :  { %p426_p1 = scmp.ne.s32.totalorder %s278_s2, %s425_s30  ;;  %p431_p3 = scmp.lt.s32.totalorder %s425_s30, %s425_s30 }
  0x2e   :  { %318 = vmatmul.mubr.msk.bf16.vlgmr.msra.gmra.mxu1 %vm63_vm2, %v59_v5 }
  0x2f   :  { %322 = vmatpush3.bf16.msra.mxu1 %v115_v7  ;;  %323 = vmatprep.mubr.msk.bf16.mxu1 %vm459_vm0, %v458_v0  ;;  %p432_p4 = por %p431_p3, %p430_p2 }
  0x30   :  { %330 = vmatpush3.bf16.msra.mxu0 %v358_v8 }
  0x31   :  { %331 = vmatprep.subr.bf16.mxu0 %v458_v0  ;;  %p433_p5 = pnand %p432_p4, %p426_p1 }
  0x34   :  { %332 = vmatpush3.bf16.msra.mxu0 %v359_v10 }
  0x35   :  { %333 = vmatprep.subr.bf16.mxu0 %v458_v0 }
  0x36   :  { %324 = vmatmul.mubr.msk.bf16.vlgmr.msra.gmra.mxu1 %vm63_vm2, %v60_v11 }
  0x38   :  { %334 = vmatpush3.bf16.msra.mxu0 %v360_v12 }
  0x39   :  { %335 = vmatprep.subr.bf16.mxu0 %v458_v0 }
  0x3c   :  { %336 = vmatpush3.bf16.msra.mxu0 %v361_v13 }
  0x3d   :  { %337 = vmatprep.subr.bf16.mxu0 %v458_v0 }
  0x40   :  { %338 = vmatpush3.bf16.msra.mxu0 %v362_v14 }
  0x41   :  { %339 = vmatprep.subr.bf16.mxu0 %v458_v0 }
  0x44   :  { %340 = vmatpush3.bf16.msra.mxu0 %v363_v15 }
  0x45   :  { %341 = vmatprep.subr.bf16.mxu0 %v458_v0 }
  0x48   :  { %342 = vmatpush3.bf16.msra.mxu0 %v364_v16 }
  0xee   :  { %v105_v17 = vpop.f32.mrf.mxu1 }
  0xf0   :  { %v319_v18 = vpop.f32.mrf.mxu1 }
  0xf2   :  { %v108_v19 = vpop.f32.mrf.mxu1 }
  0xf4   :  { %v320_v20 = vpop.f32.mrf.mxu1 }
  0xf6   :  { %v151_v21 = vpop.f32.mrf.mxu1 }
  0xf7   :  { %v301_v22 = vpack.c.bf16 %v151_v21, %v105_v17 }
  0xf8   :  { %v325_v23 = vpop.f32.mrf.mxu1 }
  0xf9   :  { %344 = vmatmul.mubr.bf16.vlgmr.msra.gmra.mxu0 %v301_v22 }
  0xfa   :  { %v154_v24 = vpop.f32.mrf.mxu1 }
  0xfc   :  { %v326_v25 = vpop.f32.mrf.mxu1 }
 0x1b9   :  { %v263_v26 = vpop.f32.mrf.mxu0 }
 0x1ba   :  { %270 = vst [vmem:[#allocation8] sm:$0xff] %v263_v26 }
 0x1bb   :  { %v345_v27 = vpop.f32.mrf.mxu0 }
 0x1bd   :  { %v266_v28 = vpop.f32.mrf.mxu0 }
 0x1be   :  { %271 = vst [vmem:[#allocation8 + $0x8] sm:$0xff] %v266_v28 }
 0x1bf   :  { %v346_v29 = vpop.f32.mrf.mxu0 }
 0x1c0   :  { %436 = shalt.err (!%p433_p5)
}
 0x1c1   :  { %283 = dma.vmem_to_hbm [thread:$0]  %s278_s2, 256, %s507_s3, [#allocation4], %s452_s15, %s452_s15, %s453_s16  }
 0x1c2   :  { %449 = dma.done.wait [#allocation4], 256  }
 0x1c3   :  { %450 = vsyncadd [#allocation4], 4294967040 }
 0x1c4   :  { %287 = vsyncpa [#allocation3], 1 }
 0x1c5   :  { %288 = vsyncpa [#allocation6], 1 }
 0x1c6   :  { %289 = vsyncpa [#allocation4], 1 }

</bundles_post_ra>
